<compile_context>
chip_gen: v7x
topology: tpu7x:2x2x1
jax: 0.10.0
libtpu: 0.0.40
codegen_flags: <defaults>
</compile_context>

<pallas_src>
import jax
import jax.numpy as jnp
from jax.experimental import pallas as pl
from jax.experimental.pallas import tpu as pltpu


def _default_compute_dtype():
    """bf16 MXU operands on v6e/v7x and newer; f32 on v5e and older."""
    try:
        kind = jax.devices()[0].device_kind.lower()
    except Exception:
        return jnp.float32
    if any(s in kind for s in ("v2", "v3", "v4", "v5")):
        return jnp.float32
    return jnp.bfloat16


def _make_lstm_kernel(T, B, E, keep_xw_in_regs, unroll, compute_dtype):
    """Build the single-invocation LSTM kernel for fixed (T, B, E)."""
    H4 = 4 * E

    def kernel(x_ref, wih_ref, whh_ref, b_ref, h_out_ref, *scratch):
        # Non-recurrent input projection, hoisted out of the serial time loop:
        # one lane-dense (T*B, E) @ (E, 4E) matmul, bias added once, f32 acc.
        xw = (jnp.dot(x_ref[...], wih_ref[...],
                      preferred_element_type=jnp.float32)
              + b_ref[...])                              # (T*B, 4E) f32

        whh = whh_ref[...]                               # resident across steps

        def gate_math(gates, h, c):
            # Fused gate order is [i | f | o | g]: one sigmoid pass over the
            # contiguous (B, 3E) block, tanh only on g and on c_new
            # (3 transcendental passes per step instead of 5).
            sig = jax.nn.sigmoid(gates[:, : 3 * E])
            i = sig[:, 0 * E:1 * E]
            f = sig[:, 1 * E:2 * E]
            o = sig[:, 2 * E:3 * E]
            g = jnp.tanh(gates[:, 3 * E:4 * E])
            c_new = f * c + i * g
            h_new = o * jnp.tanh(c_new)
            return h_new, c_new

        h0 = jnp.zeros((B, E), jnp.float32)
        c0 = jnp.zeros((B, E), jnp.float32)

        if keep_xw_in_regs:
            # xw is tiny (<= ~64 KiB): keep it vreg-resident and slice it with
            # static, sublane-aligned offsets under a fully unrolled loop.
            h, c = h0, c0
            for t in range(T):
                xw_t = xw[t * B:(t + 1) * B, :]
                gates = xw_t + jnp.dot(h.astype(compute_dtype), whh,
                                       preferred_element_type=jnp.float32)
                h, c = gate_math(gates, h, c)
            h_fin = h
        else:
            # Larger shapes: park xw in VMEM scratch, stream per step.
            xw_scr = scratch[0]
            xw_scr[...] = xw.reshape(T, B, H4)

            def step(t, carry):
                h, c = carry
                gates = xw_scr[t] + jnp.dot(h.astype(compute_dtype), whh,
                                            preferred_element_type=jnp.float32)
                return gate_math(gates, h, c)

            h_fin, _ = jax.lax.fori_loop(0, T, step, (h0, c0), unroll=unroll)

        h_out_ref[...] = h_fin.astype(h_out_ref.dtype)   # single final (B, E) store

    return kernel


def prepare_lstm_params(W_ih, W_hh, b_ih, b_hh, compute_dtype=None):
    """One-time (param-load-time) fusion of torch.nn.LSTM params.

    torch: W_* is (4E, E) with gate rows [i; f; g; o], gates = x @ W^T + b.
    Fused layout: (E, 4E) lane-dense with gate order [i | f | o | g] so a single
    sigmoid covers the first 3E lanes and tanh only touches the last E.
    Weights stored in compute_dtype (bf16 on v6e/v7x); bias kept f32.
    """
    if compute_dtype is None:
        compute_dtype = _default_compute_dtype()
    four_e, E = W_ih.shape
    assert four_e == 4 * E
    perm = jnp.concatenate([
        jnp.arange(0 * E, 1 * E),      # i
        jnp.arange(1 * E, 2 * E),      # f
        jnp.arange(3 * E, 4 * E),      # o
        jnp.arange(2 * E, 3 * E),      # g
    ])
    wih_all = jnp.asarray(W_ih, jnp.float32)[perm].T.astype(compute_dtype)  # (E, 4E)
    whh_all = jnp.asarray(W_hh, jnp.float32)[perm].T.astype(compute_dtype)  # (E, 4E)
    b_all = (jnp.asarray(b_ih, jnp.float32)
             + jnp.asarray(b_hh, jnp.float32))[perm].reshape(1, 4 * E)      # f32
    return wih_all, whh_all, b_all


def lstm_final_hidden(x_flat, wih_all, whh_all, b_all, num_records):
    """x_flat: (T*B, E) seq-major. Returns final hidden state (B, E) in f32."""
    TB, E = x_flat.shape
    T = num_records
    assert T >= 1 and TB % T == 0
    B = TB // T
    H4 = wih_all.shape[1]
    compute_dtype = wih_all.dtype

    xw_bytes = T * B * H4 * 4                       # f32 projection result
    keep_xw_in_regs = xw_bytes <= 64 * 1024         # <= ~16 of 64 vregs
    unroll = True if T <= 16 else 8                 # cap unroll at larger T

    scratch_shapes = ([] if keep_xw_in_regs
                      else [pltpu.VMEM((T, B, H4), jnp.float32)])

    # Explicit VMEM budget (bytes): inputs + weights + scratch + output, with
    # headroom for double-buffering; capped below v7x's 64 MiB physical VMEM.
    est = (x_flat.size * x_flat.dtype.itemsize
           + (wih_all.size + whh_all.size) * jnp.dtype(compute_dtype).itemsize
           + b_all.size * 4
           + (0 if keep_xw_in_regs else xw_bytes)
           + B * E * 4)
    vmem_limit = int(min(max(4 * est, 16 << 20), 64 << 20))

    kernel = _make_lstm_kernel(T, B, E, keep_xw_in_regs, unroll, compute_dtype)

    return pl.pallas_call(
        kernel,
        out_shape=jax.ShapeDtypeStruct((B, E), jnp.float32),
        in_specs=[
            pl.BlockSpec(memory_space=pltpu.MemorySpace.VMEM),  # x (T*B, E)
            pl.BlockSpec(memory_space=pltpu.MemorySpace.VMEM),  # W_ih fused (E, 4E)
            pl.BlockSpec(memory_space=pltpu.MemorySpace.VMEM),  # W_hh fused (E, 4E)
            pl.BlockSpec(memory_space=pltpu.MemorySpace.VMEM),  # bias (1, 4E)
        ],
        out_specs=pl.BlockSpec(memory_space=pltpu.MemorySpace.VMEM),
        scratch_shapes=scratch_shapes,
        compiler_params=pltpu.CompilerParams(vmem_limit_bytes=vmem_limit),
    )(x_flat, wih_all, whh_all, b_all)


def recurrent_block_forward(record_list, fused_params):
    """Pallas equivalent of RecurrentBlock.forward(record_list)."""
    assert len(record_list) >= 1, "need at least one record"
    wih_all, whh_all, b_all = fused_params
    records = jnp.stack(record_list)                 # (T, batch, num_nodes, E)
    T = records.shape[0]
    num_nodes = records.shape[-2]
    E = records.shape[-1]
    x = records.reshape(T, -1, E)                    # (T, B_flat, E)
    B_flat = x.shape[1]
    # Cast MXU operands to the weight compute dtype (bf16 on v6e/v7x, f32 on v5e).
    x_flat = x.reshape(T * B_flat, E).astype(wih_all.dtype)

    h_last = lstm_final_hidden(x_flat, wih_all, whh_all, b_all, T)  # (B_flat, E)
    return h_last.reshape(-1, num_nodes, E)          # (batch, num_nodes, E)


def _reference_forward(record_list, W_ih, W_hh, b_ih, b_hh):
    """Pure-JAX f32 reference (torch gate order, lax.scan) for correctness."""
    records = jnp.stack(record_list)
    T = records.shape[0]
    num_nodes = records.shape[-2]
    E = records.shape[-1]
    x = records.reshape(T, -1, E)
    B = x.shape[1]

    def step(carry, x_t):
        h, c = carry
        gates = x_t @ W_ih.T + b_ih + h @ W_hh.T + b_hh
        i, f, g, o = jnp.split(gates, 4, axis=-1)
        i, f, o = jax.nn.sigmoid(i), jax.nn.sigmoid(f), jax.nn.sigmoid(o)
        g = jnp.tanh(g)
        c = f * c + i * g
        h = o * jnp.tanh(c)
        return (h, c), None

    (h, _), _ = jax.lax.scan(step, (jnp.zeros((B, E)), jnp.zeros((B, E))), x)
    return h.reshape(-1, num_nodes, E)


if __name__ == "__main__":
    # Small shapes consistent with the module: T=8 records, each (batch=2, num_nodes=4, E=32).
    embed_dim = 32
    num_records = 8
    batch = 2
    num_nodes = 4

    key = jax.random.PRNGKey(0)
    k_x, k_wih, k_whh, k_bih, k_bhh = jax.random.split(key, 5)

    record_list = [
        jax.random.normal(jax.random.fold_in(k_x, t),
                          (batch, num_nodes, embed_dim), dtype=jnp.float32)
        for t in range(num_records)
    ]

    # Deterministic param init, matching torch.nn.LSTM shapes & U(-1/sqrt(H), 1/sqrt(H)) scale.
    bound = 1.0 / (embed_dim ** 0.5)
    W_ih = jax.random.uniform(k_wih, (4 * embed_dim, embed_dim), jnp.float32, -bound, bound)
    W_hh = jax.random.uniform(k_whh, (4 * embed_dim, embed_dim), jnp.float32, -bound, bound)
    b_ih = jax.random.uniform(k_bih, (4 * embed_dim,), jnp.float32, -bound, bound)
    b_hh = jax.random.uniform(k_bhh, (4 * embed_dim,), jnp.float32, -bound, bound)

    # One-time param fusion (load time), reused across forward calls.
    compute_dtype = _default_compute_dtype()
    fused_params = prepare_lstm_params(W_ih, W_hh, b_ih, b_hh, compute_dtype)

    out = recurrent_block_forward(record_list, fused_params)
    out = jax.block_until_ready(out)

    ref = _reference_forward(record_list, W_ih, W_hh, b_ih, b_hh)
    assert out.shape == (batch, num_nodes, embed_dim), out.shape
    # bf16 MXU operands on v6e/v7x -> looser tolerance vs the f32 reference.
    tol = 1e-4 if jnp.dtype(compute_dtype) == jnp.dtype(jnp.float32) else 5e-2
    assert jnp.allclose(out, ref, atol=tol, rtol=tol), \
        float(jnp.max(jnp.abs(out - ref)))

    print("KERNEL_OK")
</pallas_src>

<mosaic_0001>
module attributes {stable_mosaic.version = 11 : i64} {
  func.func @kernel(%arg0: memref<64x32xbf16, #tpu.memory_space<vmem>>, %arg1: memref<32x128xbf16, #tpu.memory_space<vmem>>, %arg2: memref<32x128xbf16, #tpu.memory_space<vmem>>, %arg3: memref<1x128xf32, #tpu.memory_space<vmem>>, %arg4: memref<8x32xf32, #tpu.memory_space<vmem>>) attributes {dimension_semantics = [], scalar_prefetch = 0 : i64, scratch_operands = 0 : i64, tpu.core_type = #tpu.core_type<tc>} {
    %c0 = arith.constant 0 : index
    %c0_0 = arith.constant 0 : index
    %0 = vector.load %arg0[%c0, %c0_0] : memref<64x32xbf16, #tpu.memory_space<vmem>>, vector<64x32xbf16>
    %c0_1 = arith.constant 0 : index
    %c0_2 = arith.constant 0 : index
    %1 = vector.load %arg1[%c0_1, %c0_2] : memref<32x128xbf16, #tpu.memory_space<vmem>>, vector<32x128xbf16>
    %cst = arith.constant dense<0.000000e+00> : vector<64x128xf32>
    %2 = tpu.matmul %0, %1, %cst {dimension_numbers = #tpu.dot_dimension_numbers<[1], [0], [0], [1], [0, 0, 1, 1], [], []>} : vector<64x32xbf16>, vector<32x128xbf16>, vector<64x128xf32> -> vector<64x128xf32>
    %c0_3 = arith.constant 0 : index
    %c0_4 = arith.constant 0 : index
    %3 = vector.load %arg3[%c0_3, %c0_4] : memref<1x128xf32, #tpu.memory_space<vmem>>, vector<1x128xf32>
    %4 = vector.broadcast %3 : vector<1x128xf32> to vector<64x128xf32>
    %5 = arith.addf %2, %4 : vector<64x128xf32>
    %c0_5 = arith.constant 0 : index
    %c0_6 = arith.constant 0 : index
    %6 = vector.load %arg2[%c0_5, %c0_6] : memref<32x128xbf16, #tpu.memory_space<vmem>>, vector<32x128xbf16>
    %cst_7 = arith.constant 0.000000e+00 : f32
    %7 = vector.broadcast %cst_7 : f32 to vector<8x32xf32>
    %cst_8 = arith.constant 0.000000e+00 : f32
    %8 = vector.broadcast %cst_8 : f32 to vector<8x32xf32>
    %9 = vector.extract_strided_slice %5 {offsets = [0, 0], sizes = [8, 128], strides = [1, 1]} : vector<64x128xf32> to vector<8x128xf32>
    %10 = arith.truncf %7 : vector<8x32xf32> to vector<8x32xbf16>
    %cst_9 = arith.constant dense<0.000000e+00> : vector<8x128xf32>
    %11 = tpu.matmul %10, %6, %cst_9 {dimension_numbers = #tpu.dot_dimension_numbers<[1], [0], [0], [1], [0, 0, 1, 1], [], []>} : vector<8x32xbf16>, vector<32x128xbf16>, vector<8x128xf32> -> vector<8x128xf32>
    %12 = arith.addf %9, %11 : vector<8x128xf32>
    %13 = vector.extract_strided_slice %12 {offsets = [0, 0], sizes = [8, 96], strides = [1, 1]} : vector<8x128xf32> to vector<8x96xf32>
    %14 = arith.negf %13 : vector<8x96xf32>
    %15 = math.exp %14 : vector<8x96xf32>
    %cst_10 = arith.constant 1.000000e+00 : f32
    %16 = vector.broadcast %cst_10 : f32 to vector<8x96xf32>
    %17 = arith.addf %16, %15 : vector<8x96xf32>
    %18 = arith.divf %16, %17 : vector<8x96xf32>
    %19 = vector.extract_strided_slice %18 {offsets = [0, 0], sizes = [8, 32], strides = [1, 1]} : vector<8x96xf32> to vector<8x32xf32>
    %20 = vector.extract_strided_slice %18 {offsets = [0, 32], sizes = [8, 32], strides = [1, 1]} : vector<8x96xf32> to vector<8x32xf32>
    %21 = vector.extract_strided_slice %18 {offsets = [0, 64], sizes = [8, 32], strides = [1, 1]} : vector<8x96xf32> to vector<8x32xf32>
    %22 = vector.extract_strided_slice %12 {offsets = [0, 96], sizes = [8, 32], strides = [1, 1]} : vector<8x128xf32> to vector<8x32xf32>
    %23 = math.tanh %22 : vector<8x32xf32>
    %24 = arith.mulf %20, %8 : vector<8x32xf32>
    %25 = arith.mulf %19, %23 : vector<8x32xf32>
    %26 = arith.addf %24, %25 : vector<8x32xf32>
    %27 = math.tanh %26 : vector<8x32xf32>
    %28 = arith.mulf %21, %27 : vector<8x32xf32>
    %29 = vector.extract_strided_slice %5 {offsets = [8, 0], sizes = [8, 128], strides = [1, 1]} : vector<64x128xf32> to vector<8x128xf32>
    %30 = arith.truncf %28 : vector<8x32xf32> to vector<8x32xbf16>
    %cst_11 = arith.constant dense<0.000000e+00> : vector<8x128xf32>
    %31 = tpu.matmul %30, %6, %cst_11 {dimension_numbers = #tpu.dot_dimension_numbers<[1], [0], [0], [1], [0, 0, 1, 1], [], []>} : vector<8x32xbf16>, vector<32x128xbf16>, vector<8x128xf32> -> vector<8x128xf32>
    %32 = arith.addf %29, %31 : vector<8x128xf32>
    %33 = vector.extract_strided_slice %32 {offsets = [0, 0], sizes = [8, 96], strides = [1, 1]} : vector<8x128xf32> to vector<8x96xf32>
    %34 = arith.negf %33 : vector<8x96xf32>
    %35 = math.exp %34 : vector<8x96xf32>
    %cst_12 = arith.constant 1.000000e+00 : f32
    %36 = vector.broadcast %cst_12 : f32 to vector<8x96xf32>
    %37 = arith.addf %36, %35 : vector<8x96xf32>
    %38 = arith.divf %36, %37 : vector<8x96xf32>
    %39 = vector.extract_strided_slice %38 {offsets = [0, 0], sizes = [8, 32], strides = [1, 1]} : vector<8x96xf32> to vector<8x32xf32>
    %40 = vector.extract_strided_slice %38 {offsets = [0, 32], sizes = [8, 32], strides = [1, 1]} : vector<8x96xf32> to vector<8x32xf32>
    %41 = vector.extract_strided_slice %38 {offsets = [0, 64], sizes = [8, 32], strides = [1, 1]} : vector<8x96xf32> to vector<8x32xf32>
    %42 = vector.extract_strided_slice %32 {offsets = [0, 96], sizes = [8, 32], strides = [1, 1]} : vector<8x128xf32> to vector<8x32xf32>
    %43 = math.tanh %42 : vector<8x32xf32>
    %44 = arith.mulf %40, %26 : vector<8x32xf32>
    %45 = arith.mulf %39, %43 : vector<8x32xf32>
    %46 = arith.addf %44, %45 : vector<8x32xf32>
    %47 = math.tanh %46 : vector<8x32xf32>
    %48 = arith.mulf %41, %47 : vector<8x32xf32>
    %49 = vector.extract_strided_slice %5 {offsets = [16, 0], sizes = [8, 128], strides = [1, 1]} : vector<64x128xf32> to vector<8x128xf32>
    %50 = arith.truncf %48 : vector<8x32xf32> to vector<8x32xbf16>
    %cst_13 = arith.constant dense<0.000000e+00> : vector<8x128xf32>
    %51 = tpu.matmul %50, %6, %cst_13 {dimension_numbers = #tpu.dot_dimension_numbers<[1], [0], [0], [1], [0, 0, 1, 1], [], []>} : vector<8x32xbf16>, vector<32x128xbf16>, vector<8x128xf32> -> vector<8x128xf32>
    %52 = arith.addf %49, %51 : vector<8x128xf32>
    %53 = vector.extract_strided_slice %52 {offsets = [0, 0], sizes = [8, 96], strides = [1, 1]} : vector<8x128xf32> to vector<8x96xf32>
    %54 = arith.negf %53 : vector<8x96xf32>
    %55 = math.exp %54 : vector<8x96xf32>
    %cst_14 = arith.constant 1.000000e+00 : f32
    %56 = vector.broadcast %cst_14 : f32 to vector<8x96xf32>
    %57 = arith.addf %56, %55 : vector<8x96xf32>
    %58 = arith.divf %56, %57 : vector<8x96xf32>
    %59 = vector.extract_strided_slice %58 {offsets = [0, 0], sizes = [8, 32], strides = [1, 1]} : vector<8x96xf32> to vector<8x32xf32>
    %60 = vector.extract_strided_slice %58 {offsets = [0, 32], sizes = [8, 32], strides = [1, 1]} : vector<8x96xf32> to vector<8x32xf32>
    %61 = vector.extract_strided_slice %58 {offsets = [0, 64], sizes = [8, 32], strides = [1, 1]} : vector<8x96xf32> to vector<8x32xf32>
    %62 = vector.extract_strided_slice %52 {offsets = [0, 96], sizes = [8, 32], strides = [1, 1]} : vector<8x128xf32> to vector<8x32xf32>
    %63 = math.tanh %62 : vector<8x32xf32>
    %64 = arith.mulf %60, %46 : vector<8x32xf32>
    %65 = arith.mulf %59, %63 : vector<8x32xf32>
    %66 = arith.addf %64, %65 : vector<8x32xf32>
    %67 = math.tanh %66 : vector<8x32xf32>
    %68 = arith.mulf %61, %67 : vector<8x32xf32>
    %69 = vector.extract_strided_slice %5 {offsets = [24, 0], sizes = [8, 128], strides = [1, 1]} : vector<64x128xf32> to vector<8x128xf32>
    %70 = arith.truncf %68 : vector<8x32xf32> to vector<8x32xbf16>
    %cst_15 = arith.constant dense<0.000000e+00> : vector<8x128xf32>
    %71 = tpu.matmul %70, %6, %cst_15 {dimension_numbers = #tpu.dot_dimension_numbers<[1], [0], [0], [1], [0, 0, 1, 1], [], []>} : vector<8x32xbf16>, vector<32x128xbf16>, vector<8x128xf32> -> vector<8x128xf32>
    %72 = arith.addf %69, %71 : vector<8x128xf32>
    %73 = vector.extract_strided_slice %72 {offsets = [0, 0], sizes = [8, 96], strides = [1, 1]} : vector<8x128xf32> to vector<8x96xf32>
    %74 = arith.negf %73 : vector<8x96xf32>
    %75 = math.exp %74 : vector<8x96xf32>
    %cst_16 = arith.constant 1.000000e+00 : f32
    %76 = vector.broadcast %cst_16 : f32 to vector<8x96xf32>
    %77 = arith.addf %76, %75 : vector<8x96xf32>
    %78 = arith.divf %76, %77 : vector<8x96xf32>
    %79 = vector.extract_strided_slice %78 {offsets = [0, 0], sizes = [8, 32], strides = [1, 1]} : vector<8x96xf32> to vector<8x32xf32>
    %80 = vector.extract_strided_slice %78 {offsets = [0, 32], sizes = [8, 32], strides = [1, 1]} : vector<8x96xf32> to vector<8x32xf32>
    %81 = vector.extract_strided_slice %78 {offsets = [0, 64], sizes = [8, 32], strides = [1, 1]} : vector<8x96xf32> to vector<8x32xf32>
    %82 = vector.extract_strided_slice %72 {offsets = [0, 96], sizes = [8, 32], strides = [1, 1]} : vector<8x128xf32> to vector<8x32xf32>
    %83 = math.tanh %82 : vector<8x32xf32>
    %84 = arith.mulf %80, %66 : vector<8x32xf32>
    %85 = arith.mulf %79, %83 : vector<8x32xf32>
    %86 = arith.addf %84, %85 : vector<8x32xf32>
    %87 = math.tanh %86 : vector<8x32xf32>
    %88 = arith.mulf %81, %87 : vector<8x32xf32>
    %89 = vector.extract_strided_slice %5 {offsets = [32, 0], sizes = [8, 128], strides = [1, 1]} : vector<64x128xf32> to vector<8x128xf32>
    %90 = arith.truncf %88 : vector<8x32xf32> to vector<8x32xbf16>
    %cst_17 = arith.constant dense<0.000000e+00> : vector<8x128xf32>
    %91 = tpu.matmul %90, %6, %cst_17 {dimension_numbers = #tpu.dot_dimension_numbers<[1], [0], [0], [1], [0, 0, 1, 1], [], []>} : vector<8x32xbf16>, vector<32x128xbf16>, vector<8x128xf32> -> vector<8x128xf32>
    %92 = arith.addf %89, %91 : vector<8x128xf32>
    %93 = vector.extract_strided_slice %92 {offsets = [0, 0], sizes = [8, 96], strides = [1, 1]} : vector<8x128xf32> to vector<8x96xf32>
    %94 = arith.negf %93 : vector<8x96xf32>
    %95 = math.exp %94 : vector<8x96xf32>
    %cst_18 = arith.constant 1.000000e+00 : f32
    %96 = vector.broadcast %cst_18 : f32 to vector<8x96xf32>
    %97 = arith.addf %96, %95 : vector<8x96xf32>
    %98 = arith.divf %96, %97 : vector<8x96xf32>
    %99 = vector.extract_strided_slice %98 {offsets = [0, 0], sizes = [8, 32], strides = [1, 1]} : vector<8x96xf32> to vector<8x32xf32>
    %100 = vector.extract_strided_slice %98 {offsets = [0, 32], sizes = [8, 32], strides = [1, 1]} : vector<8x96xf32> to vector<8x32xf32>
    %101 = vector.extract_strided_slice %98 {offsets = [0, 64], sizes = [8, 32], strides = [1, 1]} : vector<8x96xf32> to vector<8x32xf32>
    %102 = vector.extract_strided_slice %92 {offsets = [0, 96], sizes = [8, 32], strides = [1, 1]} : vector<8x128xf32> to vector<8x32xf32>
    %103 = math.tanh %102 : vector<8x32xf32>
    %104 = arith.mulf %100, %86 : vector<8x32xf32>
    %105 = arith.mulf %99, %103 : vector<8x32xf32>
    %106 = arith.addf %104, %105 : vector<8x32xf32>
    %107 = math.tanh %106 : vector<8x32xf32>
    %108 = arith.mulf %101, %107 : vector<8x32xf32>
    %109 = vector.extract_strided_slice %5 {offsets = [40, 0], sizes = [8, 128], strides = [1, 1]} : vector<64x128xf32> to vector<8x128xf32>
    %110 = arith.truncf %108 : vector<8x32xf32> to vector<8x32xbf16>
    %cst_19 = arith.constant dense<0.000000e+00> : vector<8x128xf32>
    %111 = tpu.matmul %110, %6, %cst_19 {dimension_numbers = #tpu.dot_dimension_numbers<[1], [0], [0], [1], [0, 0, 1, 1], [], []>} : vector<8x32xbf16>, vector<32x128xbf16>, vector<8x128xf32> -> vector<8x128xf32>
    %112 = arith.addf %109, %111 : vector<8x128xf32>
    %113 = vector.extract_strided_slice %112 {offsets = [0, 0], sizes = [8, 96], strides = [1, 1]} : vector<8x128xf32> to vector<8x96xf32>
    %114 = arith.negf %113 : vector<8x96xf32>
    %115 = math.exp %114 : vector<8x96xf32>
    %cst_20 = arith.constant 1.000000e+00 : f32
    %116 = vector.broadcast %cst_20 : f32 to vector<8x96xf32>
    %117 = arith.addf %116, %115 : vector<8x96xf32>
    %118 = arith.divf %116, %117 : vector<8x96xf32>
    %119 = vector.extract_strided_slice %118 {offsets = [0, 0], sizes = [8, 32], strides = [1, 1]} : vector<8x96xf32> to vector<8x32xf32>
    %120 = vector.extract_strided_slice %118 {offsets = [0, 32], sizes = [8, 32], strides = [1, 1]} : vector<8x96xf32> to vector<8x32xf32>
    %121 = vector.extract_strided_slice %118 {offsets = [0, 64], sizes = [8, 32], strides = [1, 1]} : vector<8x96xf32> to vector<8x32xf32>
    %122 = vector.extract_strided_slice %112 {offsets = [0, 96], sizes = [8, 32], strides = [1, 1]} : vector<8x128xf32> to vector<8x32xf32>
    %123 = math.tanh %122 : vector<8x32xf32>
    %124 = arith.mulf %120, %106 : vector<8x32xf32>
    %125 = arith.mulf %119, %123 : vector<8x32xf32>
    %126 = arith.addf %124, %125 : vector<8x32xf32>
    %127 = math.tanh %126 : vector<8x32xf32>
    %128 = arith.mulf %121, %127 : vector<8x32xf32>
    %129 = vector.extract_strided_slice %5 {offsets = [48, 0], sizes = [8, 128], strides = [1, 1]} : vector<64x128xf32> to vector<8x128xf32>
    %130 = arith.truncf %128 : vector<8x32xf32> to vector<8x32xbf16>
    %cst_21 = arith.constant dense<0.000000e+00> : vector<8x128xf32>
    %131 = tpu.matmul %130, %6, %cst_21 {dimension_numbers = #tpu.dot_dimension_numbers<[1], [0], [0], [1], [0, 0, 1, 1], [], []>} : vector<8x32xbf16>, vector<32x128xbf16>, vector<8x128xf32> -> vector<8x128xf32>
    %132 = arith.addf %129, %131 : vector<8x128xf32>
    %133 = vector.extract_strided_slice %132 {offsets = [0, 0], sizes = [8, 96], strides = [1, 1]} : vector<8x128xf32> to vector<8x96xf32>
    %134 = arith.negf %133 : vector<8x96xf32>
    %135 = math.exp %134 : vector<8x96xf32>
    %cst_22 = arith.constant 1.000000e+00 : f32
    %136 = vector.broadcast %cst_22 : f32 to vector<8x96xf32>
    %137 = arith.addf %136, %135 : vector<8x96xf32>
    %138 = arith.divf %136, %137 : vector<8x96xf32>
    %139 = vector.extract_strided_slice %138 {offsets = [0, 0], sizes = [8, 32], strides = [1, 1]} : vector<8x96xf32> to vector<8x32xf32>
    %140 = vector.extract_strided_slice %138 {offsets = [0, 32], sizes = [8, 32], strides = [1, 1]} : vector<8x96xf32> to vector<8x32xf32>
    %141 = vector.extract_strided_slice %138 {offsets = [0, 64], sizes = [8, 32], strides = [1, 1]} : vector<8x96xf32> to vector<8x32xf32>
    %142 = vector.extract_strided_slice %132 {offsets = [0, 96], sizes = [8, 32], strides = [1, 1]} : vector<8x128xf32> to vector<8x32xf32>
    %143 = math.tanh %142 : vector<8x32xf32>
    %144 = arith.mulf %140, %126 : vector<8x32xf32>
    %145 = arith.mulf %139, %143 : vector<8x32xf32>
    %146 = arith.addf %144, %145 : vector<8x32xf32>
    %147 = math.tanh %146 : vector<8x32xf32>
    %148 = arith.mulf %141, %147 : vector<8x32xf32>
    %149 = vector.extract_strided_slice %5 {offsets = [56, 0], sizes = [8, 128], strides = [1, 1]} : vector<64x128xf32> to vector<8x128xf32>
    %150 = arith.truncf %148 : vector<8x32xf32> to vector<8x32xbf16>
    %cst_23 = arith.constant dense<0.000000e+00> : vector<8x128xf32>
    %151 = tpu.matmul %150, %6, %cst_23 {dimension_numbers = #tpu.dot_dimension_numbers<[1], [0], [0], [1], [0, 0, 1, 1], [], []>} : vector<8x32xbf16>, vector<32x128xbf16>, vector<8x128xf32> -> vector<8x128xf32>
    %152 = arith.addf %149, %151 : vector<8x128xf32>
    %153 = vector.extract_strided_slice %152 {offsets = [0, 0], sizes = [8, 96], strides = [1, 1]} : vector<8x128xf32> to vector<8x96xf32>
    %154 = arith.negf %153 : vector<8x96xf32>
    %155 = math.exp %154 : vector<8x96xf32>
    %cst_24 = arith.constant 1.000000e+00 : f32
    %156 = vector.broadcast %cst_24 : f32 to vector<8x96xf32>
    %157 = arith.addf %156, %155 : vector<8x96xf32>
    %158 = arith.divf %156, %157 : vector<8x96xf32>
    %159 = vector.extract_strided_slice %158 {offsets = [0, 0], sizes = [8, 32], strides = [1, 1]} : vector<8x96xf32> to vector<8x32xf32>
    %160 = vector.extract_strided_slice %158 {offsets = [0, 32], sizes = [8, 32], strides = [1, 1]} : vector<8x96xf32> to vector<8x32xf32>
    %161 = vector.extract_strided_slice %158 {offsets = [0, 64], sizes = [8, 32], strides = [1, 1]} : vector<8x96xf32> to vector<8x32xf32>
    %162 = vector.extract_strided_slice %152 {offsets = [0, 96], sizes = [8, 32], strides = [1, 1]} : vector<8x128xf32> to vector<8x32xf32>
    %163 = math.tanh %162 : vector<8x32xf32>
    %164 = arith.mulf %160, %146 : vector<8x32xf32>
    %165 = arith.mulf %159, %163 : vector<8x32xf32>
    %166 = arith.addf %164, %165 : vector<8x32xf32>
    %167 = math.tanh %166 : vector<8x32xf32>
    %168 = arith.mulf %161, %167 : vector<8x32xf32>
    %c0_25 = arith.constant 0 : index
    %c0_26 = arith.constant 0 : index
    %169 = vector.load %arg4[%c0_25, %c0_26] : memref<8x32xf32, #tpu.memory_space<vmem>>, vector<8x32xf32>
    tpu.vector_store %arg4[%c0_25, %c0_26], %168 {strides = array<i32>} : memref<8x32xf32, #tpu.memory_space<vmem>>, vector<8x32xf32>,
    return
  }
}

</mosaic_0001>

<bundles_post_ra>
// kernel: tpu_custom_call.1
= control target key start
LH: loop header
LB: loop body
LE: loop exit
PB: predicated region body
PF: predicated region fallthrough
CT: control target
= control target key end

     0   :  { %v991_v1 = vmov 0.0   ;;  %vm70_vm0 = vcmask 261120   ;;  %vm992_vm1 = vmmov 0   ;;  %s1185_s0 = inlined_call_operand.vmem [shape: bf16[64,32], index: 0, kind: input, shape index: {}]   ;;  %s1186_s1 = inlined_call_operand.vmem [shape: bf16[32,128], index: 1, kind: input, shape index: {}]   ;;  %s1187_s2 = inlined_call_operand.vmem [shape: bf16[32,128], index: 2, kind: input, shape index: {}]   ;;  %s1188_s3 = inlined_call_operand.vmem [shape: f32[1,128], index: 3, kind: input, shape index: {}]   ;;  %s1189_s4 = inlined_call_operand.hbm [shape: f32[8,32], index: 4, kind: output, shape index: {}]  }
   0x1   :  { %v895_v0 = vld [vmem:[%s1186_s1] sm:$0xff]   ;;  %825 = vmatprep.subr.bf16.mxu1 %v991_v1  ;;  %v897_v3 = vld [vmem:[%s1186_s1 + $0x8] sm:$0xff]   ;;  %829 = vmatprep.mubr.msk.bf16.mxu1 %vm992_vm1, %v991_v1 }
   0x2   :  { %v1029_v2 = vld [vmem:[%s1187_s2] sm:$0xff]   ;;  %813 = vmatprep.subr.bf16.mxu0 %v895_v0  ;;  %v1038_v4 = vld [vmem:[%s1187_s2 + $0x8] sm:$0xff]  }
   0x3   :  { %814 = vmatpush3.bf16.msra.mxu0 %v895_v0  ;;  %826 = vmatpush3.bf16.msra.mxu1 %v1029_v2  ;;  %v899_v5 = vld [vmem:[%s1185_s0] sm:$0xff]   ;;  %v900_v6 = vld [vmem:[%s1185_s0 + $0x8] sm:$0xff]  }
   0x4   :  { %815 = vmatprep.subr.bf16.mxu0 %v897_v3  ;;  %827 = vmatprep.subr.bf16.mxu1 %v991_v1 }
   0x5   :  { %817 = vmatprep.mubr.msk.bf16.mxu0 %vm70_vm0, %v899_v5 }
   0x7   :  { %816 = vmatpush3.bf16.msra.mxu0 %v897_v3  ;;  %828 = vmatpush3.bf16.msra.mxu1 %v1038_v4 }
   0x8   :  { %9 = vsyncpa [#allocation3], 0  ;;  %833 = vmatprep.subr.bf16.mxu1 %v991_v1  ;;  %841 = vmatprep.subr.bf16.mxu0 %v991_v1  ;;  %v993_v7 = vmov 0   ;;  %v1067_v8 = vld [vmem:[%s1188_s3] ss:$0 sm:$0xff]  ;;  %s994_s27 = smov 32  }
   0x9   :  { %s995_s3 = smov 64   ;;  %v901_v50 = vld [vmem:[%s1185_s0 + $0x10] sm:$0xff]   ;;  %v902_v51 = vld [vmem:[%s1185_s0 + $0x18] sm:$0xff]   ;;  %s996_s0 = smov [#allocation2]  }
   0xa   :  { %818 = vmatmul.mubr.msk.bf16.vlgmr.msra.gmra.mrb[0].mxu0 %vm70_vm0, %v900_v6  ;;  %830 = vmatmul.mubr.bf16.vlgmr.msra.gmra.mrb[0].mxu1 %v993_v7  ;;  %s747_s6 = sshll.u32 %s996_s0, 4  ;;  %s748_s6 = int_to_ptr.vmem [resolvable:$true] %s747_s6 }
   0xb   :  { %834 = vmatpush3.bf16.msra.mxu1 %v1029_v2  ;;  %837 = vmatprep.mubr.msk.bf16.mxu1 %vm992_vm1, %v991_v1  ;;  %s967_s7 = scalar_lea.vmem %s748_s6, 128  ;;  %p972_p1 = scmp.lt.s32.totalorder %s748_s6, %s748_s6 }
   0xc   :  { %835 = vmatprep.subr.bf16.mxu1 %v991_v1  ;;  %842 = vmatpush3.bf16.msra.mxu0 %v1029_v2  ;;  %p968_p0 = scmp.ne.s32.totalorder %s748_s6, %s967_s7  ;;  %p973_p2 = scmp.lt.s32.totalorder %s967_s7, %s967_s7 }
   0xd   :  { %843 = vmatprep.subr.bf16.mxu0 %v991_v1  ;;  %821 = vmatprep.mubr.msk.bf16.mxu0 %vm70_vm0, %v901_v50 }
   0xe   :  { %p974_p3 = por %p973_p2, %p972_p1 }
   0xf   :  { %836 = vmatpush3.bf16.msra.mxu1 %v1038_v4 }
  0x10   :  { %844 = vmatpush3.bf16.msra.mxu0 %v1038_v4  ;;  %849 = vmatprep.subr.bf16.mxu1 %v991_v1  ;;  %p975_p4 = pnand %p974_p3, %p968_p0 }
  0x11   :  { %857 = vmatprep.subr.bf16.mxu0 %v991_v1 }
  0x12   :  { %822 = vmatmul.mubr.msk.bf16.gmra.mrb[4].mxu0 %vm70_vm0, %v902_v51 }
  0x13   :  { %845 = vmatprep.mubr.msk.bf16.mxu0 %vm992_vm1, %v991_v1 }
  0xdd   :  { %v1069_v9 = vpop.f32.mrb[0].mxu0  ;;  %v201_v10 = vpop.f32.mrb[0].mxu1 }
  0xde   :  { %v117_v11 = vpop.f32.mrb[1].mxu0  ;;  %v831_v12 = vpop.f32.mrb[1].mxu1  ;;  %v126_v61 = vadd.f32 %v1069_v9, %v1067_v8 }
  0xdf   :  { %v118_v13 = vadd.f32 %v1067_v8, %v117_v11  ;;  %v1072_v14 = vpop.f32.mrb[2].mxu0  ;;  %v204_v15 = vpop.f32.mrb[2].mxu1 }
  0xe0   :  { %v120_v16 = vpop.f32.mrb[3].mxu0  ;;  %v832_v17 = vpop.f32.mrb[3].mxu1 }
  0xe1   :  { %v207_v18 = vadd.f32 %v201_v10, %v118_v13  ;;  %v121_v34 = vadd.f32 %v1067_v8, %v120_v16 }
  0xe3   :  { %903 = vtanh.f32 %v207_v18  ;;  %v768_v20 = vmul.f32 -1.442695, %v207_v18 }
  0xe5   :  { %905 = vpow2.f32 %v768_v20  ;;  %v1100_v56 = vpop.f32.mrb[4].mxu0 }
  0xe6   :  { %v1102_v57 = vpop.f32.mrb[5].mxu0 }
  0xe7   :  { %v1104_v58 = vpop.f32.mrb[6].mxu0 }
  0xe8   :  { %v1106_v59 = vpop.f32.mrb[7].mxu0 }
  0xed   :  { %v904_v19 = vpop.eup %903 }
  0xee   :  { %217 = vrot.lane.b32.xlu0 %v904_v19, %s994_s27 }
  0xef   :  { %v906_v21 = vpop.eup %905 }
  0xf0   :  { %v211_v22 = vadd.f32 1.0, %v906_v21 }
  0xf2   :  { %907 = vrcp.f32 %v211_v22 }
  0xfc   :  { %v908_v23 = vpop.eup %907 }
  0xfd   :  { %v215_v26 = vmul.f32 0.0, %v908_v23 }
 0x160   :  { %v218_v24 = vpop.permute.xlu0 %217 }
 0x161   :  { %v220_v25 = vmul.f32 %v908_v23, %v218_v24 }
 0x163   :  { %222 = vrot.lane.b32.xlu0 %v220_v25, %s994_s27 }
 0x1d5   :  { %v223_v27 = vpop.permute.xlu0 %222 }
 0x1d6   :  { %v225_v28 = vadd.f32 %v223_v27, %v215_v26 }
 0x1d8   :  { %909 = vtanh.f32 %v225_v28 }
 0x1e2   :  { %v910_v29 = vpop.eup %909 }
 0x1e3   :  { %228 = vrot.lane.b32.xlu1 %v910_v29, %s994_s27 }
 0x255   :  { %v229_v30 = vpop.permute.xlu1 %228 }
 0x256   :  { %v231_v31 = vmul.f32 %v908_v23, %v229_v30  ;;  %v129_v23 = vadd.f32 %v1072_v14, %v1067_v8 }
 0x258   :  { %v232_v32 = vpack.c.bf16 %v231_v31, %v231_v31 }
 0x25a   :  { %234 = vrot.lane.b32.xlu1 %v232_v32, %s995_s3 }
 0x2cc   :  { %v235_v33 = vpop.permute.xlu1 %234 }
 0x2cd   :  { %838 = vmatmul.mubr.msk.bf16.vlgmr.msra.gmra.mrb[4].mxu1 %vm70_vm0, %v235_v33 }
 0x2ce   :  { %850 = vmatpush3.bf16.msra.mxu1 %v1029_v2  ;;  %853 = vmatprep.mubr.msk.bf16.mxu1 %vm992_vm1, %v991_v1 }
 0x2cf   :  { %851 = vmatprep.subr.bf16.mxu1 %v991_v1 }
 0x2d2   :  { %852 = vmatpush3.bf16.msra.mxu1 %v1038_v4 }
 0x2d3   :  { %865 = vmatprep.subr.bf16.mxu1 %v991_v1 }
 0x3a0   :  { %v273_v35 = vpop.f32.mrb[4].mxu1 }
 0x3a1   :  { %v279_v36 = vadd.f32 %v273_v35, %v121_v34  ;;  %v839_v37 = vpop.f32.mrb[5].mxu1 }
 0x3a2   :  { %v276_v38 = vpop.f32.mrb[6].mxu1 }
 0x3a3   :  { %911 = vtanh.f32 %v279_v36  ;;  %v840_v39 = vpop.f32.mrb[7].mxu1  ;;  %v770_v41 = vmul.f32 -1.442695, %v279_v36 }
 0x3a5   :  { %913 = vpow2.f32 %v770_v41 }
 0x3ad   :  { %v912_v40 = vpop.eup %911 }
 0x3ae   :  { %289 = vrot.lane.b32.xlu0 %v912_v40, %s994_s27 }
 0x3af   :  { %v914_v42 = vpop.eup %913 }
 0x3b0   :  { %v283_v43 = vadd.f32 1.0, %v914_v42 }
 0x3b2   :  { %915 = vrcp.f32 %v283_v43  ;;  %v134_v43 = vadd.f32 %v1067_v8, %v1102_v57 }
 0x3bc   :  { %v916_v44 = vpop.eup %915 }
 0x3bd   :  { %v287_v47 = vmul.f32 %v916_v44, %v225_v28 }
 0x420   :  { %v290_v45 = vpop.permute.xlu0 %289 }
 0x421   :  { %v292_v46 = vmul.f32 %v916_v44, %v290_v45 }
 0x423   :  { %294 = vrot.lane.b32.xlu1 %v292_v46, %s994_s27 }
 0x495   :  { %v295_v48 = vpop.permute.xlu1 %294 }
 0x496   :  { %v297_v49 = vadd.f32 %v295_v48, %v287_v47 }
 0x498   :  { %917 = vtanh.f32 %v297_v49 }
 0x4a2   :  { %v918_v52 = vpop.eup %917 }
 0x4a3   :  { %300 = vrot.lane.b32.xlu0 %v918_v52, %s994_s27 }
 0x515   :  { %v301_v53 = vpop.permute.xlu0 %300 }
 0x516   :  { %v303_v54 = vmul.f32 %v916_v44, %v301_v53 }
 0x518   :  { %v304_v55 = vpack.c.bf16 %v303_v54, %v303_v54 }
 0x51a   :  { %306 = vrot.lane.b32.xlu1 %v304_v55, %s995_s3 }
 0x58c   :  { %v307_v60 = vpop.permute.xlu1 %306 }
 0x58d   :  { %846 = vmatmul.mubr.msk.bf16.vlgmr.msra.gmra.mrb[8].mxu0 %vm70_vm0, %v307_v60 }
 0x58e   :  { %858 = vmatpush3.bf16.msra.mxu0 %v1029_v2  ;;  %861 = vmatprep.mubr.msk.bf16.mxu0 %vm992_vm1, %v991_v1 }
 0x58f   :  { %859 = vmatprep.subr.bf16.mxu0 %v991_v1 }
 0x592   :  { %860 = vmatpush3.bf16.msra.mxu0 %v1038_v4 }
 0x593   :  { %873 = vmatprep.subr.bf16.mxu0 %v991_v1 }
 0x660   :  { %v345_v62 = vpop.f32.mrb[8].mxu0 }
 0x661   :  { %v351_v63 = vadd.f32 %v345_v62, %v126_v61  ;;  %v847_v0 = vpop.f32.mrb[9].mxu0 }
 0x662   :  { %v348_v3 = vpop.f32.mrb[10].mxu0 }
 0x663   :  { %919 = vtanh.f32 %v351_v63  ;;  %v848_v5 = vpop.f32.mrb[11].mxu0  ;;  %v772_v7 = vmul.f32 -1.442695, %v351_v63 }
 0x665   :  { %921 = vpow2.f32 %v772_v7 }
 0x66d   :  { %v920_v6 = vpop.eup %919 }
 0x66e   :  { %361 = vrot.lane.b32.xlu0 %v920_v6, %s994_s27  ;;  %v137_v6 = vadd.f32 %v1067_v8, %v1106_v59 }
 0x66f   :  { %v922_v10 = vpop.eup %921 }
 0x670   :  { %v355_v11 = vadd.f32 1.0, %v922_v10 }
 0x672   :  { %923 = vrcp.f32 %v355_v11 }
 0x67c   :  { %v924_v12 = vpop.eup %923 }
 0x67d   :  { %v359_v9 = vmul.f32 %v924_v12, %v297_v49 }
 0x6e0   :  { %v362_v13 = vpop.permute.xlu0 %361 }
 0x6e1   :  { %v364_v15 = vmul.f32 %v924_v12, %v362_v13 }
 0x6e3   :  { %366 = vrot.lane.b32.xlu1 %v364_v15, %s994_s27 }
 0x755   :  { %v367_v16 = vpop.permute.xlu1 %366 }
 0x756   :  { %v369_v17 = vadd.f32 %v367_v16, %v359_v9 }
 0x758   :  { %925 = vtanh.f32 %v369_v17 }
 0x762   :  { %v926_v18 = vpop.eup %925 }
 0x763   :  { %372 = vrot.lane.b32.xlu0 %v926_v18, %s994_s27 }
 0x7d5   :  { %v373_v19 = vpop.permute.xlu0 %372 }
 0x7d6   :  { %v375_v20 = vmul.f32 %v924_v12, %v373_v19 }
 0x7d8   :  { %v376_v21 = vpack.c.bf16 %v375_v20, %v375_v20 }
 0x7da   :  { %378 = vrot.lane.b32.xlu1 %v376_v21, %s995_s3 }
 0x84c   :  { %v379_v22 = vpop.permute.xlu1 %378 }
 0x84d   :  { %854 = vmatmul.mubr.msk.bf16.vlgmr.msra.gmra.mrb[8].mxu1 %vm70_vm0, %v379_v22 }
 0x84e   :  { %866 = vmatpush3.bf16.msra.mxu1 %v1029_v2  ;;  %869 = vmatprep.mubr.msk.bf16.mxu1 %vm992_vm1, %v991_v1 }
 0x84f   :  { %867 = vmatprep.subr.bf16.mxu1 %v991_v1 }
 0x852   :  { %868 = vmatpush3.bf16.msra.mxu1 %v1038_v4 }
 0x853   :  { %881 = vmatprep.subr.bf16.mxu1 %v991_v1 }
 0x920   :  { %v417_v24 = vpop.f32.mrb[8].mxu1 }
 0x921   :  { %v423_v25 = vadd.f32 %v417_v24, %v129_v23  ;;  %v855_v26 = vpop.f32.mrb[9].mxu1 }
 0x922   :  { %v420_v27 = vpop.f32.mrb[10].mxu1 }
 0x923   :  { %927 = vtanh.f32 %v423_v25  ;;  %v856_v28 = vpop.f32.mrb[11].mxu1  ;;  %v774_v30 = vmul.f32 -1.442695, %v423_v25  ;;  %v142_v25 = vadd.f32 %v1100_v56, %v1067_v8 }
 0x925   :  { %929 = vpow2.f32 %v774_v30 }
 0x92d   :  { %v928_v29 = vpop.eup %927 }
 0x92e   :  { %433 = vrot.lane.b32.xlu0 %v928_v29, %s994_s27 }
 0x92f   :  { %v930_v31 = vpop.eup %929 }
 0x930   :  { %v427_v32 = vadd.f32 1.0, %v930_v31 }
 0x932   :  { %931 = vrcp.f32 %v427_v32 }
 0x93c   :  { %v932_v33 = vpop.eup %931 }
 0x93d   :  { %v431_v14 = vmul.f32 %v932_v33, %v369_v17 }
 0x9a0   :  { %v434_v34 = vpop.permute.xlu0 %433 }
 0x9a1   :  { %v436_v35 = vmul.f32 %v932_v33, %v434_v34 }
 0x9a3   :  { %438 = vrot.lane.b32.xlu1 %v436_v35, %s994_s27 }
 0xa15   :  { %v439_v36 = vpop.permute.xlu1 %438 }
 0xa16   :  { %v441_v37 = vadd.f32 %v439_v36, %v431_v14 }
 0xa18   :  { %933 = vtanh.f32 %v441_v37 }
 0xa22   :  { %v934_v38 = vpop.eup %933 }
 0xa23   :  { %444 = vrot.lane.b32.xlu0 %v934_v38, %s994_s27 }
 0xa95   :  { %v445_v39 = vpop.permute.xlu0 %444 }
 0xa96   :  { %v447_v40 = vmul.f32 %v932_v33, %v445_v39 }
 0xa98   :  { %v448_v41 = vpack.c.bf16 %v447_v40, %v447_v40 }
 0xa9a   :  { %450 = vrot.lane.b32.xlu1 %v448_v41, %s995_s3 }
 0xb0c   :  { %v451_v42 = vpop.permute.xlu1 %450 }
 0xb0d   :  { %862 = vmatmul.mubr.msk.bf16.vlgmr.msra.gmra.mrb[12].mxu0 %vm70_vm0, %v451_v42 }
 0xb0e   :  { %874 = vmatpush3.bf16.msra.mxu0 %v1029_v2  ;;  %877 = vmatprep.mubr.msk.bf16.mxu0 %vm992_vm1, %v991_v1 }
 0xb0f   :  { %875 = vmatprep.subr.bf16.mxu0 %v991_v1 }
 0xb12   :  { %876 = vmatpush3.bf16.msra.mxu0 %v1038_v4 }
 0xbe0   :  { %v489_v44 = vpop.f32.mrb[12].mxu0 }
 0xbe1   :  { %v495_v45 = vadd.f32 %v489_v44, %v134_v43  ;;  %v863_v46 = vpop.f32.mrb[13].mxu0  ;;  %v145_v44 = vadd.f32 %v1104_v58, %v1067_v8 }
 0xbe2   :  { %v492_v47 = vpop.f32.mrb[14].mxu0 }
 0xbe3   :  { %935 = vtanh.f32 %v495_v45  ;;  %v864_v48 = vpop.f32.mrb[15].mxu0  ;;  %v776_v50 = vmul.f32 -1.442695, %v495_v45 }
 0xbe5   :  { %937 = vpow2.f32 %v776_v50 }
 0xbed   :  { %v936_v49 = vpop.eup %935 }
 0xbee   :  { %505 = vrot.lane.b32.xlu0 %v936_v49, %s994_s27 }
 0xbef   :  { %v938_v51 = vpop.eup %937 }
 0xbf0   :  { %v499_v52 = vadd.f32 1.0, %v938_v51 }
 0xbf2   :  { %939 = vrcp.f32 %v499_v52 }
 0xbfc   :  { %v940_v53 = vpop.eup %939 }
 0xbfd   :  { %v503_v57 = vmul.f32 %v940_v53, %v441_v37 }
 0xc60   :  { %v506_v54 = vpop.permute.xlu0 %505 }
 0xc61   :  { %v508_v55 = vmul.f32 %v940_v53, %v506_v54 }
 0xc63   :  { %510 = vrot.lane.b32.xlu1 %v508_v55, %s994_s27 }
 0xcd5   :  { %v511_v60 = vpop.permute.xlu1 %510 }
 0xcd6   :  { %v513_v61 = vadd.f32 %v511_v60, %v503_v57 }
 0xcd8   :  { %941 = vtanh.f32 %v513_v61 }
 0xce2   :  { %v942_v62 = vpop.eup %941 }
 0xce3   :  { %516 = vrot.lane.b32.xlu0 %v942_v62, %s994_s27 }
 0xd55   :  { %v517_v63 = vpop.permute.xlu0 %516 }
 0xd56   :  { %v519_v0 = vmul.f32 %v940_v53, %v517_v63 }
 0xd58   :  { %v520_v3 = vpack.c.bf16 %v519_v0, %v519_v0 }
 0xd5a   :  { %522 = vrot.lane.b32.xlu1 %v520_v3, %s995_s3 }
 0xdcc   :  { %v523_v5 = vpop.permute.xlu1 %522 }
 0xdcd   :  { %870 = vmatmul.mubr.msk.bf16.vlgmr.msra.gmra.mrb[12].mxu1 %vm70_vm0, %v523_v5 }
 0xdce   :  { %882 = vmatpush3.bf16.msra.mxu1 %v1029_v2  ;;  %885 = vmatprep.mubr.msk.bf16.mxu1 %vm992_vm1, %v991_v1 }
 0xdcf   :  { %883 = vmatprep.subr.bf16.mxu1 %v991_v1 }
 0xdd2   :  { %884 = vmatpush3.bf16.msra.mxu1 %v1038_v4 }
 0xea0   :  { %v561_v7 = vpop.f32.mrb[12].mxu1 }
 0xea1   :  { %v567_v10 = vadd.f32 %v561_v7, %v137_v6  ;;  %v871_v11 = vpop.f32.mrb[13].mxu1 }
 0xea2   :  { %v564_v12 = vpop.f32.mrb[14].mxu1 }
 0xea3   :  { %943 = vtanh.f32 %v567_v10  ;;  %v872_v13 = vpop.f32.mrb[15].mxu1  ;;  %v778_v2 = vmul.f32 -1.442695, %v567_v10 }
 0xea5   :  { %945 = vpow2.f32 %v778_v2 }
 0xead   :  { %v944_v15 = vpop.eup %943 }
 0xeae   :  { %577 = vrot.lane.b32.xlu0 %v944_v15, %s994_s27 }
 0xeaf   :  { %v946_v9 = vpop.eup %945 }
 0xeb0   :  { %v571_v16 = vadd.f32 1.0, %v946_v9 }
 0xeb2   :  { %947 = vrcp.f32 %v571_v16 }
 0xebc   :  { %v948_v1 = vpop.eup %947 }
 0xebd   :  { %v575_v59 = vmul.f32 %v948_v1, %v513_v61 }
 0xf20   :  { %v578_v17 = vpop.permute.xlu0 %577 }
 0xf21   :  { %v580_v4 = vmul.f32 %v948_v1, %v578_v17 }
 0xf23   :  { %582 = vrot.lane.b32.xlu1 %v580_v4, %s994_s27 }
 0xf95   :  { %v583_v18 = vpop.permute.xlu1 %582 }
 0xf96   :  { %v585_v19 = vadd.f32 %v583_v18, %v575_v59 }
 0xf98   :  { %949 = vtanh.f32 %v585_v19 }
 0xfa2   :  { %v950_v20 = vpop.eup %949 }
 0xfa3   :  { %588 = vrot.lane.b32.xlu0 %v950_v20, %s994_s27 }
0x1015   :  { %v589_v21 = vpop.permute.xlu0 %588 }
0x1016   :  { %v591_v22 = vmul.f32 %v948_v1, %v589_v21 }
0x1018   :  { %v592_v23 = vpack.c.bf16 %v591_v22, %v591_v22 }
0x101a   :  { %594 = vrot.lane.b32.xlu1 %v592_v23, %s995_s3 }
0x108c   :  { %v595_v24 = vpop.permute.xlu1 %594 }
0x108d   :  { %878 = vmatmul.mubr.msk.bf16.vlgmr.msra.gmra.mrb[16].mxu0 %vm70_vm0, %v595_v24 }
0x1160   :  { %v633_v26 = vpop.f32.mrb[16].mxu0 }
0x1161   :  { %v639_v27 = vadd.f32 %v633_v26, %v142_v25  ;;  %v879_v28 = vpop.f32.mrb[17].mxu0 }
0x1162   :  { %v636_v29 = vpop.f32.mrb[18].mxu0 }
0x1163   :  { %951 = vtanh.f32 %v639_v27  ;;  %v880_v30 = vpop.f32.mrb[19].mxu0  ;;  %v780_v32 = vmul.f32 -1.442695, %v639_v27 }
0x1165   :  { %953 = vpow2.f32 %v780_v32 }
0x116d   :  { %v952_v31 = vpop.eup %951 }
0x116e   :  { %649 = vrot.lane.b32.xlu0 %v952_v31, %s994_s27 }
0x116f   :  { %v954_v33 = vpop.eup %953 }
0x1170   :  { %v643_v34 = vadd.f32 1.0, %v954_v33 }
0x1172   :  { %955 = vrcp.f32 %v643_v34 }
0x117c   :  { %v956_v35 = vpop.eup %955 }
0x117d   :  { %v647_v56 = vmul.f32 %v956_v35, %v585_v19 }
0x11e0   :  { %v650_v14 = vpop.permute.xlu0 %649 }
0x11e1   :  { %v652_v36 = vmul.f32 %v956_v35, %v650_v14 }
0x11e3   :  { %654 = vrot.lane.b32.xlu1 %v652_v36, %s994_s27 }
0x1255   :  { %v655_v37 = vpop.permute.xlu1 %654 }
0x1256   :  { %v657_v38 = vadd.f32 %v655_v37, %v647_v56 }
0x1258   :  { %957 = vtanh.f32 %v657_v38 }
0x1262   :  { %v958_v39 = vpop.eup %957 }
0x1263   :  { %660 = vrot.lane.b32.xlu0 %v958_v39, %s994_s27 }
0x12d5   :  { %v661_v40 = vpop.permute.xlu0 %660 }
0x12d6   :  { %v663_v41 = vmul.f32 %v956_v35, %v661_v40 }
0x12d8   :  { %v664_v42 = vpack.c.bf16 %v663_v41, %v663_v41 }
0x12da   :  { %666 = vrot.lane.b32.xlu1 %v664_v42, %s995_s3 }
0x134c   :  { %v667_v43 = vpop.permute.xlu1 %666 }
0x134d   :  { %886 = vmatmul.mubr.msk.bf16.vlgmr.msra.gmra.mrb[16].mxu1 %vm70_vm0, %v667_v43 }
0x1420   :  { %v705_v45 = vpop.f32.mrb[16].mxu1 }
0x1421   :  { %v711_v46 = vadd.f32 %v705_v45, %v145_v44  ;;  %v887_v47 = vpop.f32.mrb[17].mxu1 }
0x1422   :  { %v708_v48 = vpop.f32.mrb[18].mxu1 }
0x1423   :  { %959 = vtanh.f32 %v711_v46  ;;  %v888_v49 = vpop.f32.mrb[19].mxu1  ;;  %v782_v51 = vmul.f32 -1.442695, %v711_v46 }
0x1425   :  { %961 = vpow2.f32 %v782_v51 }
0x142d   :  { %v960_v50 = vpop.eup %959 }
0x142e   :  { %721 = vrot.lane.b32.xlu0 %v960_v50, %s994_s27 }
0x142f   :  { %v962_v52 = vpop.eup %961 }
0x1430   :  { %v715_v53 = vadd.f32 1.0, %v962_v52 }
0x1432   :  { %963 = vrcp.f32 %v715_v53 }
0x143c   :  { %v964_v54 = vpop.eup %963 }
0x143d   :  { %v719_v8 = vmul.f32 %v964_v54, %v657_v38 }
0x14a0   :  { %v722_v55 = vpop.permute.xlu0 %721 }
0x14a1   :  { %v724_v57 = vmul.f32 %v964_v54, %v722_v55 }
0x14a3   :  { %726 = vrot.lane.b32.xlu1 %v724_v57, %s994_s27 }
0x1515   :  { %v727_v58 = vpop.permute.xlu1 %726 }
0x1516   :  { %v729_v60 = vadd.f32 %v727_v58, %v719_v8 }
0x1518   :  { %965 = vtanh.f32 %v729_v60 }
0x1522   :  { %v966_v61 = vpop.eup %965 }
0x1523   :  { %732 = vrot.lane.b32.xlu0 %v966_v61, %s994_s27 }
0x1595   :  { %v733_v62 = vpop.permute.xlu0 %732 }
0x1596   :  { %v735_v63 = vmul.f32 %v964_v54, %v733_v62 }
0x1598   :  { %737 = vrot.lane.b32.xlu1 %v735_v63, %s995_s3 }
0x160a   :  { %v738_v0 = vpop.permute.xlu1 %737 }
0x160b   :  { %740 = vst.msk [vmem:[#allocation2] sm:$0xff] %vm70_vm0, %v738_v0 }
0x160c   :  { %978 = shalt.err (!%p975_p4)
}
0x160d   :  { %s979_s10 = scalar_lea.hbm %s1189_s4, 128 }
0x160e   :  { %p980_p5 = scmp.ne.s32.totalorder %s1189_s4, %s979_s10  ;;  %p983_p6 = scmp.lt.u32.totalorder %s979_s10, %s1189_s4 }
0x1610   :  { %p985_p7 = pnand %p983_p6, %p980_p5 }
0x1612   :  { %988 = shalt.err (!%p985_p7)
}
0x1613   :  { %750 = dma.vmem_to_hbm [thread:$0]  %s748_s6, 128, %s1189_s4, [#allocation3]  }
0x1614   :  { %989 = dma.done.wait [#allocation3], 128  }
0x1615   :  { %990 = vsyncadd [#allocation3], 4294967168 }
0x1616   :  { %754 = vsyncpa [#allocation3], 1 }

</bundles_post_ra>
